<compile_context>
chip_gen: v7x
topology: tpu7x:2x2x1
jax: 0.10.0
libtpu: 0.0.40
codegen_flags: <defaults>
</compile_context>

<pallas_src>
import functools

import jax
import jax.numpy as jnp
from jax import lax
from jax.experimental import pallas as pl
from jax.experimental.pallas import tpu as pltpu

HIDDEN = 96                      # model.config.hidden_size
CLS_SIZE = 32                    # classification_layer_size
D = HIDDEN + CLS_SIZE            # 128 (lane-aligned)
VOCAB = 256                      # model.config.vocab_size
LN_EPS = 1e-5                    # torch.nn.LayerNorm default eps


def _decoder_kernel(x_ref, lab_ref, w1_ref, w2_ref, cpack_ref, o_ref, *,
                    inv_temperature, seq_len, seqs_per_tile):
    d = w1_ref.shape[1]
    x = x_ref[...]                                   # (tm, HIDDEN) bf16
    cpack = cpack_ref[...]                           # (8, VOCAB) f32 packed constants
    u = cpack[0:1, :d]                               # cls_w @ W1[HIDDEN:]
    v = cpack[1:2, :d]                               # cls_b @ W1[HIDDEN:] + b1
    gamma = cpack[2:3, :d]                           # LayerNorm weight
    beta = cpack[3:4, :d]                            # LayerNorm bias
    b2 = cpack[4:5, :]                               # linear2 bias

    # decoder.linear1, hidden part on the MXU (bf16 in, f32 accumulate).
    h = jnp.dot(x, w1_ref[...], preferred_element_type=jnp.float32)     # (tm, D) f32

    # classification_layer folded into linear1: per-row bias = label * u + v.
    if seqs_per_tile > 0:
        # Per-sequence labels (1, k, 1); broadcast each label to its seq_len rows.
        # seq_len % 8 == 0 => the reshape is a free sublane-tile merge.
        lab = lab_ref[0]                                                 # (k, 1) f32
        seq_bias = lab * u + v                                           # (k, D) f32
        bias = jnp.broadcast_to(seq_bias[:, None, :],
                                (seqs_per_tile, seq_len, d))
        bias = bias.reshape(seqs_per_tile * seq_len, d)                  # (tm, D)
    else:
        # Fallback (seq_len % 8 != 0): per-row label column tile (tm, 1).
        bias = lab_ref[...] * u + v                                      # (tm, D)
    h = h + bias

    # decoder.relu
    h = jnp.maximum(h, 0.0)
    # decoder.norm: LayerNorm over the last dim (biased variance, as in torch), f32.
    mean = jnp.mean(h, axis=-1, keepdims=True)
    cen = h - mean
    var = jnp.mean(cen * cen, axis=-1, keepdims=True)
    h = cen * lax.rsqrt(var + LN_EPS) * gamma + beta
    # decoder.linear2 -> prediction_scores (bf16 operands, f32 accumulate).
    logits = jnp.dot(h.astype(jnp.bfloat16), w2_ref[...],
                     preferred_element_type=jnp.float32) + b2
    # prediction_scores / temperature (statically skipped when temperature == 1.0).
    if inv_temperature != 1.0:
        logits = logits * inv_temperature
    # LogSoftmax(dim=-1) in f32; stored as bf16 (halves output HBM bytes).
    m = jnp.max(logits, axis=-1, keepdims=True)
    lse = jnp.log(jnp.sum(jnp.exp(logits - m), axis=-1, keepdims=True)) + m
    o_ref[...] = (logits - lse).astype(o_ref.dtype)


def _choose_seqs_per_tile(nseq, seq_len, *, max_rows=1024, min_steps=4):
    """Sequences per tile k such that k | nseq (no padding), k*seq_len <= max_rows
    when possible, tiles satisfy the (8, .) sublane rule, and the grid has at least
    min_steps steps (>= 2 per TensorCore on v7x megacore) whenever divisors allow."""
    divs = [dv for dv in range(1, nseq + 1) if nseq % dv == 0]
    # hidden/out blocks need second-minor dim divisible by 8 or equal the full dim.
    valid = [dv for dv in divs if (dv * seq_len) % 8 == 0 or dv == nseq]
    fitting = [dv for dv in valid if dv * seq_len <= max_rows] or [min(valid)]
    k = max(fitting)
    while nseq // k < min_steps:
        smaller = [dv for dv in fitting if dv < k]
        if not smaller:
            break
        k = max(smaller)
    return k


def decoder_log_softmax(hidden, labels_seq, seq_len, w1_h, w2, cpack,
                        *, temperature=1.0, max_rows=1024, min_steps=4):
    """hidden: (N, HIDDEN) bf16, labels_seq: (N/seq_len,) f32 -> (N, VOCAB) bf16 log-probs."""
    n, k_in = hidden.shape
    nseq = labels_seq.shape[0]
    assert nseq * seq_len == n
    d = w1_h.shape[1]
    vocab = w2.shape[1]

    k = _choose_seqs_per_tile(nseq, seq_len, max_rows=max_rows, min_steps=min_steps)
    tm = k * seq_len
    grid = nseq // k

    if seq_len % 8 == 0:
        # Per-sequence label blocks: (grid, k, 1) f32, broadcast to rows in-kernel.
        lab_arr = labels_seq.astype(jnp.float32).reshape(grid, k, 1)
        lab_spec = pl.BlockSpec((1, k, 1), lambda i: (i, 0, 0))
        seqs_per_tile = k
    else:
        # TODO(synk): odd seq_len falls back to a per-row label column (accepted
        # VMEM/DMA cost); never hit for typical BERT-style sequence lengths.
        lab_arr = jnp.repeat(labels_seq.astype(jnp.float32), seq_len)[:, None]
        lab_spec = pl.BlockSpec((tm, 1), lambda i: (i, 0))
        seqs_per_tile = 0

    kernel = functools.partial(
        _decoder_kernel,
        inv_temperature=1.0 / float(temperature),
        seq_len=seq_len,
        seqs_per_tile=seqs_per_tile)

    return pl.pallas_call(
        kernel,
        out_shape=jax.ShapeDtypeStruct((n, vocab), jnp.bfloat16),
        grid_spec=pltpu.PrefetchScalarGridSpec(
            num_scalar_prefetch=0,
            grid=(grid,),
            in_specs=[
                pl.BlockSpec((tm, k_in), lambda i: (i, 0)),      # hidden tile (bf16)
                lab_spec,                                        # labels
                pl.BlockSpec((k_in, d), lambda i: (0, 0)),       # W1[:HIDDEN] (bf16)
                pl.BlockSpec((d, vocab), lambda i: (0, 0)),      # W2 (bf16)
                pl.BlockSpec((8, vocab), lambda i: (0, 0)),      # packed u/v/gamma/beta/b2
            ],
            out_specs=pl.BlockSpec((tm, vocab), lambda i: (i, 0)),
        ),
        compiler_params=pltpu.CompilerParams(
            dimension_semantics=("parallel",),
            vmem_limit_bytes=32 * 1024 * 1024,
        ),
    )(hidden, lab_arr, w1_h, w2, cpack)


def init_params(key):
    ks = jax.random.split(key, 8)

    def uni(k, shape, fan_in):
        bound = 1.0 / jnp.sqrt(float(fan_in))
        return jax.random.uniform(k, shape, jnp.float32, -bound, bound)

    return {
        # Backbone stub: deterministic embedding table (stands in for self.model),
        # stored in bf16 so the gathered hidden slab is already bf16.
        "embed": (jax.random.normal(ks[0], (VOCAB, HIDDEN), jnp.float32)
                  * 0.02).astype(jnp.bfloat16),
        # classification_layer: Linear(1 -> CLS_SIZE)
        "cls_w": uni(ks[1], (1, CLS_SIZE), 1),
        "cls_b": uni(ks[2], (CLS_SIZE,), 1),
        # decoder.linear1: Linear(D -> D)
        "w1": uni(ks[3], (D, D), D),
        "b1": uni(ks[4], (1, D), D),
        # decoder.norm: LayerNorm(D)
        "gamma": jnp.ones((1, D), jnp.float32),
        "beta": jnp.zeros((1, D), jnp.float32),
        # decoder.linear2: Linear(D -> VOCAB)
        "w2": uni(ks[5], (D, VOCAB), D),
        "b2": uni(ks[6], (1, VOCAB), D),
    }


def _prepare_operands(params):
    """Fold classification_layer into linear1 and pack the small per-feature vectors."""
    w1 = params["w1"]
    w1_h = w1[:HIDDEN, :].astype(jnp.bfloat16)                     # (HIDDEN, D)
    w1_c = w1[HIDDEN:, :]                                          # (CLS, D), f32
    u = params["cls_w"] @ w1_c                                     # (1, D)
    v = params["cls_b"][None, :] @ w1_c + params["b1"]             # (1, D)
    w2 = params["w2"].astype(jnp.bfloat16)                         # (D, VOCAB)

    cpack = jnp.zeros((8, VOCAB), jnp.float32)
    cpack = cpack.at[0, :D].set(u[0])
    cpack = cpack.at[1, :D].set(v[0])
    cpack = cpack.at[2, :D].set(params["gamma"][0])
    cpack = cpack.at[3, :D].set(params["beta"][0])
    cpack = cpack.at[4, :].set(params["b2"][0])
    return w1_h, w2, cpack


def generator_reinforcement_forward(params, input_ids, attention_mask,
                                    token_type_ids, classification_labels,
                                    *, training=False, temperature=2.0):
    B, G, S = input_ids.shape                        # view(-1, 4, ...) => G == 4
    assert G == 4
    flat_ids = input_ids.reshape(-1, S)              # (B*4, S)
    del attention_mask, token_type_ids               # consumed only by the stubbed backbone
    # TODO(synk): the transformer backbone (self.model) has no clean single-kernel
    # Pallas equivalent; it is stubbed with a deterministic embedding lookup that
    # produces the last hidden state model_outputs[1][-1].
    hidden2d = params["embed"][flat_ids].reshape(-1, HIDDEN)       # (N, HIDDEN) bf16

    # classification_layer(labels.view(-1,1)) folded into linear1:
    #   (label * cls_w + cls_b) @ W1[HIDDEN:] + b1 == label * u + v
    labels_seq = classification_labels.reshape(-1).astype(jnp.float32)   # (B*4,)

    w1_h, w2, cpack = _prepare_operands(params)

    # TODO(synk): one_hot_of_known_words masking is None by default and thus skipped.
    # Matches PyTorch: temperature = 1.0 if not self.training else self.temperature.
    t = temperature if training else 1.0
    scores = decoder_log_softmax(hidden2d, labels_seq, S, w1_h, w2, cpack,
                                 temperature=t)
    # bf16 log-probs; prediction_scores.view(-1, 4, S, V)
    return scores.reshape(B, G, S, VOCAB)


def _reference_forward(params, input_ids, classification_labels,
                       *, training=False, temperature=2.0):
    """Pure-JAX reference of the same math (f32, same bf16 weight quantization)."""
    B, G, S = input_ids.shape
    flat_ids = input_ids.reshape(-1, S)
    hidden = params["embed"][flat_ids].reshape(-1, HIDDEN).astype(jnp.float32)
    labels = classification_labels.reshape(-1).astype(jnp.float32)
    lab_rows = jnp.repeat(labels, S)[:, None]

    w1 = params["w1"]
    w1_h = w1[:HIDDEN, :].astype(jnp.bfloat16).astype(jnp.float32)
    w1_c = w1[HIDDEN:, :]
    u = params["cls_w"] @ w1_c
    v = params["cls_b"][None, :] @ w1_c + params["b1"]
    h = hidden @ w1_h + lab_rows * u + v
    h = jnp.maximum(h, 0.0)
    mean = h.mean(-1, keepdims=True)
    var = ((h - mean) ** 2).mean(-1, keepdims=True)
    h = (h - mean) * lax.rsqrt(var + LN_EPS) * params["gamma"] + params["beta"]
    h = h.astype(jnp.bfloat16).astype(jnp.float32)
    w2 = params["w2"].astype(jnp.bfloat16).astype(jnp.float32)
    logits = h @ w2 + params["b2"]
    t = temperature if training else 1.0
    lp = jax.nn.log_softmax(logits / t, axis=-1)
    return lp.reshape(B, G, S, VOCAB)


if __name__ == "__main__":
    key = jax.random.PRNGKey(0)
    k_ids, k_lbl, k_par = jax.random.split(key, 3)

    B, G, S = 2, 4, 8
    input_ids = jax.random.randint(k_ids, (B, G, S), 0, VOCAB, dtype=jnp.int32)
    attention_mask = jnp.ones((B, G, S), jnp.int32)
    token_type_ids = jnp.zeros((B, G, S), jnp.int32)
    classification_labels = jax.random.randint(k_lbl, (B, G), 0, 2).astype(jnp.float32)

    params = init_params(k_par)

    out = generator_reinforcement_forward(
        params, input_ids, attention_mask, token_type_ids, classification_labels,
        training=False)
    out = jax.block_until_ready(out)
    assert out.shape == (B, 4, S, VOCAB)

    out_f32 = out.astype(jnp.float32)
    # log_softmax rows must sum to 1 in prob space (bf16 output -> loose tolerance).
    assert jnp.allclose(jnp.exp(out_f32).sum(-1), 1.0, atol=5e-2)
    # Cross-check against a pure-JAX reference of the same math.
    ref = _reference_forward(params, input_ids, classification_labels, training=False)
    max_err = jnp.max(jnp.abs(out_f32 - ref))
    assert float(max_err) < 0.1, float(max_err)
    print("KERNEL_OK")
</pallas_src>

<mosaic_0001>
module attributes {stable_mosaic.version = 11 : i64} {
  func.func @_decoder_kernel(%arg0: i32, %arg1: memref<16x96xbf16, #tpu.memory_space<vmem>>, %arg2: memref<1x2x1xf32, #tpu.memory_space<vmem>>, %arg3: memref<96x128xbf16, #tpu.memory_space<vmem>>, %arg4: memref<128x256xbf16, #tpu.memory_space<vmem>>, %arg5: memref<8x256xf32, #tpu.memory_space<vmem>>, %arg6: memref<16x256xbf16, #tpu.memory_space<vmem>>) attributes {dimension_semantics = [#tpu.dimension_semantics<parallel>], iteration_bounds = array<i64: 4>, scalar_prefetch = 0 : i64, scratch_operands = 0 : i64, tpu.core_type = #tpu.core_type<tc>, window_params = [{transform_indices = @transform_0, window_bounds = array<i64: 16, 96>}, {transform_indices = @transform_1, window_bounds = array<i64: 1, 2, 1>}, {pipeline_mode = #tpu.pipeline_mode<synchronous>, transform_indices = @transform_2, window_bounds = array<i64: 96, 128>}, {pipeline_mode = #tpu.pipeline_mode<synchronous>, transform_indices = @transform_3, window_bounds = array<i64: 128, 256>}, {pipeline_mode = #tpu.pipeline_mode<synchronous>, transform_indices = @transform_4, window_bounds = array<i64: 8, 256>}, {transform_indices = @transform_5, window_bounds = array<i64: 16, 256>}]} {
    %c0 = arith.constant 0 : index
    %c0_0 = arith.constant 0 : index
    %0 = vector.load %arg1[%c0, %c0_0] : memref<16x96xbf16, #tpu.memory_space<vmem>>, vector<16x96xbf16>
    %c0_1 = arith.constant 0 : index
    %c0_2 = arith.constant 0 : index
    %1 = vector.load %arg5[%c0_1, %c0_2] : memref<8x256xf32, #tpu.memory_space<vmem>>, vector<8x256xf32>
    %2 = vector.extract_strided_slice %1 {offsets = [0, 0], sizes = [1, 128], strides = [1, 1]} : vector<8x256xf32> to vector<1x128xf32>
    %3 = vector.extract_strided_slice %1 {offsets = [1, 0], sizes = [1, 128], strides = [1, 1]} : vector<8x256xf32> to vector<1x128xf32>
    %4 = vector.extract_strided_slice %1 {offsets = [2, 0], sizes = [1, 128], strides = [1, 1]} : vector<8x256xf32> to vector<1x128xf32>
    %5 = vector.extract_strided_slice %1 {offsets = [3, 0], sizes = [1, 128], strides = [1, 1]} : vector<8x256xf32> to vector<1x128xf32>
    %6 = vector.extract_strided_slice %1 {offsets = [4, 0], sizes = [1, 256], strides = [1, 1]} : vector<8x256xf32> to vector<1x256xf32>
    %c0_3 = arith.constant 0 : index
    %c0_4 = arith.constant 0 : index
    %7 = vector.load %arg3[%c0_3, %c0_4] : memref<96x128xbf16, #tpu.memory_space<vmem>>, vector<96x128xbf16>
    %cst = arith.constant dense<0.000000e+00> : vector<16x128xf32>
    %8 = tpu.matmul %0, %7, %cst {dimension_numbers = #tpu.dot_dimension_numbers<[1], [0], [0], [1], [0, 0, 1, 1], [], []>} : vector<16x96xbf16>, vector<96x128xbf16>, vector<16x128xf32> -> vector<16x128xf32>
    %c0_5 = arith.constant 0 : index
    %c0_6 = arith.constant 0 : index
    %c0_7 = arith.constant 0 : index
    %9 = vector.load %arg2[%c0_5, %c0_6, %c0_7] : memref<1x2x1xf32, #tpu.memory_space<vmem>>, vector<1x2x1xf32>
    %10 = vector.shape_cast %9 : vector<1x2x1xf32> to vector<2x1xf32>
    %11 = vector.broadcast %10 : vector<2x1xf32> to vector<2x128xf32>
    %12 = vector.broadcast %2 : vector<1x128xf32> to vector<2x128xf32>
    %13 = arith.mulf %11, %12 : vector<2x128xf32>
    %14 = vector.broadcast %3 : vector<1x128xf32> to vector<2x128xf32>
    %15 = arith.addf %13, %14 : vector<2x128xf32>
    %16 = vector.shape_cast %15 : vector<2x128xf32> to vector<2x1x128xf32>
    %17 = vector.shape_cast %16 : vector<2x1x128xf32> to vector<2x1x128xf32>
    %18 = vector.broadcast %17 : vector<2x1x128xf32> to vector<2x8x128xf32>
    %19 = vector.shape_cast %18 : vector<2x8x128xf32> to vector<16x128xf32>
    %20 = arith.addf %8, %19 : vector<16x128xf32>
    %cst_8 = arith.constant 0.000000e+00 : f32
    %21 = vector.broadcast %cst_8 : f32 to vector<16x128xf32>
    %22 = arith.maximumf %20, %21 : vector<16x128xf32>
    %cst_9 = arith.constant dense<0.000000e+00> : vector<16xf32>
    %23 = vector.multi_reduction <add>, %22, %cst_9 [1] : vector<16x128xf32> to vector<16xf32>
    %24 = vector.shape_cast %23 : vector<16xf32> to vector<16x1xf32>
    %cst_10 = arith.constant 1.280000e+02 : f32
    %25 = vector.broadcast %cst_10 : f32 to vector<16x1xf32>
    %26 = arith.divf %24, %25 : vector<16x1xf32>
    %27 = vector.broadcast %26 : vector<16x1xf32> to vector<16x128xf32>
    %28 = arith.subf %22, %27 : vector<16x128xf32>
    %29 = arith.mulf %28, %28 : vector<16x128xf32>
    %cst_11 = arith.constant dense<0.000000e+00> : vector<16xf32>
    %30 = vector.multi_reduction <add>, %29, %cst_11 [1] : vector<16x128xf32> to vector<16xf32>
    %31 = vector.shape_cast %30 : vector<16xf32> to vector<16x1xf32>
    %cst_12 = arith.constant 1.280000e+02 : f32
    %32 = vector.broadcast %cst_12 : f32 to vector<16x1xf32>
    %33 = arith.divf %31, %32 : vector<16x1xf32>
    %cst_13 = arith.constant 9.99999974E-6 : f32
    %34 = vector.broadcast %cst_13 : f32 to vector<16x1xf32>
    %35 = arith.addf %33, %34 : vector<16x1xf32>
    %36 = math.rsqrt %35 : vector<16x1xf32>
    %37 = vector.broadcast %36 : vector<16x1xf32> to vector<16x128xf32>
    %38 = arith.mulf %28, %37 : vector<16x128xf32>
    %39 = vector.broadcast %4 : vector<1x128xf32> to vector<16x128xf32>
    %40 = arith.mulf %38, %39 : vector<16x128xf32>
    %41 = vector.broadcast %5 : vector<1x128xf32> to vector<16x128xf32>
    %42 = arith.addf %40, %41 : vector<16x128xf32>
    %43 = arith.truncf %42 : vector<16x128xf32> to vector<16x128xbf16>
    %c0_14 = arith.constant 0 : index
    %c0_15 = arith.constant 0 : index
    %44 = vector.load %arg4[%c0_14, %c0_15] : memref<128x256xbf16, #tpu.memory_space<vmem>>, vector<128x256xbf16>
    %cst_16 = arith.constant dense<0.000000e+00> : vector<16x256xf32>
    %45 = tpu.matmul %43, %44, %cst_16 {dimension_numbers = #tpu.dot_dimension_numbers<[1], [0], [0], [1], [0, 0, 1, 1], [], []>} : vector<16x128xbf16>, vector<128x256xbf16>, vector<16x256xf32> -> vector<16x256xf32>
    %46 = vector.broadcast %6 : vector<1x256xf32> to vector<16x256xf32>
    %47 = arith.addf %45, %46 : vector<16x256xf32>
    %cst_17 = arith.constant dense<0xFF800000> : vector<16xf32>
    %48 = vector.multi_reduction <maximumf>, %47, %cst_17 [1] : vector<16x256xf32> to vector<16xf32>
    %49 = vector.shape_cast %48 : vector<16xf32> to vector<16x1xf32>
    %50 = vector.broadcast %49 : vector<16x1xf32> to vector<16x256xf32>
    %51 = arith.subf %47, %50 : vector<16x256xf32>
    %52 = math.exp %51 : vector<16x256xf32>
    %cst_18 = arith.constant dense<0.000000e+00> : vector<16xf32>
    %53 = vector.multi_reduction <add>, %52, %cst_18 [1] : vector<16x256xf32> to vector<16xf32>
    %54 = vector.shape_cast %53 : vector<16xf32> to vector<16x1xf32>
    %55 = math.log %54 : vector<16x1xf32>
    %56 = arith.addf %55, %49 : vector<16x1xf32>
    %57 = vector.broadcast %56 : vector<16x1xf32> to vector<16x256xf32>
    %58 = arith.subf %47, %57 : vector<16x256xf32>
    %59 = arith.truncf %58 : vector<16x256xf32> to vector<16x256xbf16>
    %c0_19 = arith.constant 0 : index
    %c0_20 = arith.constant 0 : index
    %60 = vector.load %arg6[%c0_19, %c0_20] : memref<16x256xbf16, #tpu.memory_space<vmem>>, vector<16x256xbf16>
    tpu.vector_store %arg6[%c0_19, %c0_20], %59 {strides = array<i32>} : memref<16x256xbf16, #tpu.memory_space<vmem>>, vector<16x256xbf16>,
    return
  }
  func.func @transform_0(%arg0: i32) -> (i32, i32) {
    %c0_i32 = arith.constant 0 : i32
    %c0_i32_0 = arith.constant 0 : i32
    return %arg0, %c0_i32 : i32, i32
  }
  func.func @transform_1(%arg0: i32) -> (i32, i32, i32) {
    %c0_i32 = arith.constant 0 : i32
    %c0_i32_0 = arith.constant 0 : i32
    %c0_i32_1 = arith.constant 0 : i32
    return %arg0, %c0_i32, %c0_i32_0 : i32, i32, i32
  }
  func.func @transform_2(%arg0: i32) -> (i32, i32) {
    %c0_i32 = arith.constant 0 : i32
    %c0_i32_0 = arith.constant 0 : i32
    %c0_i32_1 = arith.constant 0 : i32
    return %c0_i32, %c0_i32_0 : i32, i32
  }
  func.func @transform_3(%arg0: i32) -> (i32, i32) {
    %c0_i32 = arith.constant 0 : i32
    %c0_i32_0 = arith.constant 0 : i32
    %c0_i32_1 = arith.constant 0 : i32
    return %c0_i32, %c0_i32_0 : i32, i32
  }
  func.func @transform_4(%arg0: i32) -> (i32, i32) {
    %c0_i32 = arith.constant 0 : i32
    %c0_i32_0 = arith.constant 0 : i32
    %c0_i32_1 = arith.constant 0 : i32
    return %c0_i32, %c0_i32_0 : i32, i32
  }
  func.func @transform_5(%arg0: i32) -> (i32, i32) {
    %c0_i32 = arith.constant 0 : i32
    %c0_i32_0 = arith.constant 0 : i32
    return %arg0, %c0_i32 : i32, i32
  }
}

</mosaic_0001>

<bundles_post_ra>
// kernel: tpu_custom_call.1
= control target key start
LH: loop header
LB: loop body
LE: loop exit
PB: predicated region body
PF: predicated region fallthrough
CT: control target
= control target key end

     0   :  { %10 = vsyncpa [#allocation3], 0  ;;  %s1457_s0 = inlined_call_operand.hbm [shape: bf16[64,96], index: 0, kind: input, shape index: {}]   ;;  %s1458_s1 = inlined_call_operand.vmem [shape: f32[4,2,1], index: 1, kind: input, shape index: {}]   ;;  %s1459_s2 = inlined_call_operand.hbm [shape: bf16[96,128], index: 2, kind: input, shape index: {}]   ;;  %s1460_s3 = inlined_call_operand.hbm [shape: bf16[128,256], index: 3, kind: input, shape index: {}]   ;;  %s1461_s4 = inlined_call_operand.vmem [shape: f32[8,256], index: 4, kind: input, shape index: {}]   ;;  %s1462_s5 = inlined_call_operand.hbm [shape: bf16[64,256], index: 5, kind: output, shape index: {}]  }
   0x1   :  { %12 = vsyncpa [#allocation3 + $0x1], 0 }
   0x2   :  { %13 = vsyncpa [#allocation6], 0 }
   0x3   :  { %14 = vsyncpa [#allocation4], 0 }
   0x4   :  { %16 = vsyncpa [#allocation4 + $0x1], 0  ;;  %s1196_s18 = smov 0   ;;  %s1198_s19 = smov 0  }
   0x5   :  { %s1200_s20 = smov 0   ;;  %s1202_s21 = smov 0  }
   0x6 LB: > { %s1217_s22 = sadd.s32 4294967295, %s1150_s21   ;;  %s795_s23 = sadd.s32 4294967294, %s1150_s21   ;;  %s1150_s21 = sphi %s1202_s21, %s1481_s21   ;;  %s1146_s20 = sphi %s1200_s20, %s1480_s20   ;;  %s1142_s19 = sphi %s1198_s19, %s1479_s19   ;;  %s1138_s18 = sphi %s1196_s18, %s1478_s18  }
   0x7   : > { %p42_p0 = scmp.ne.s32.totalorder %s1142_s19, %s1138_s18  ;;  %p1463_p1 = scmp.eq.s32.totalorder %s1217_s22, 0 }
   0x8   : > { %p161_p3 = scmp.eq.s32.totalorder %s795_s23, 3  ;;  %p796_p5 = scmp.ge.s32.totalorder %s1150_s21, 1 }
   0x9   : > { %p1226_p4 = por %p1463_p1, %p42_p0  ;;  %p168_p7 = scmp.lt.s32.totalorder %s1150_s21, 5 }
   0xa   : > { %p1231_p6 = por %p161_p3, %p42_p0  ;;  %s1152_s27 = smov [#allocation5]  }
   0xb   : > { %s1466_s24 = scalar_select %p1226_p4, 1, 0 }
   0xc   : > { %s1467_s25 = scalar_select %p1231_p6, 1, 0 }
   0xd   : > { %p1236_p8 = pnand %p796_p5, %p168_p7  ;;  %s180_s28 = sshll.u32 %s1152_s27, 4  ;;  %s181_s28 = int_to_ptr.vmem [resolvable:$true] %s180_s28 }
   0xe   : > { %s1153_s30 = smov [#allocation7]   ;;  %s994_s9 = scalar_lea.hbm %s1459_s2, 768 }
   0xf   : > { %s1468_s26 = scalar_select %p1236_p8, 1, 0 }
  0x10   : > { %p881_p9 = pneg %p1236_p8  ;;  %s193_s6 = sshll.u32 %s1153_s30, 4  ;;  %s1248_s6 = int_to_ptr.vmem [resolvable:$true] %s193_s6 }
  0x11   : > { %p995_p11 = scmp.ne.s32.totalorder %s1459_s2, %s994_s9  ;;  %p1001_p3 = scmp.lt.u32.totalorder %s994_s9, %s1459_s2 }
  0x12   : > { %p1244_p10 = pnand %p881_p9, %p1463_p1 }
  0x14   : > { %p996_p12 = pneg %p1244_p10 }
  0x16   : > { %p997_p13 = pnand %p996_p12, %p995_p11 }
  0x18   : > { %p998_p0 = pneg %p997_p13 }
  0x1a   : > { %p1003_p5 = pnand %p1001_p3, %p998_p0 }
  0x1c   : > { %1006 = shalt.err (!%p1003_p5)
}
  0x1d   : > { %s1007_s14 = scalar_lea.vmem %s181_s28, 768  ;;  %p1015_p2 = scmp.lt.s32.totalorder %s181_s28, %s181_s28 }
  0x1e   : > { %p1008_p7 = scmp.ne.s32.totalorder %s181_s28, %s1007_s14  ;;  %p1016_p6 = scmp.lt.s32.totalorder %s1007_s14, %s1007_s14 }
  0x20   : > { %p1010_p9 = pnand %p1008_p7, %p996_p12  ;;  %p1017_p4 = por %p1016_p6, %p1015_p2 }
  0x22   : > { %p1011_p1 = pneg %p1010_p9 }
  0x24   : > { %p1018_p8 = pnand %p1017_p4, %p1011_p1 }
  0x26   : > { %1021 = shalt.err (!%p1018_p8)
}
  0x27   : > { %s1154_s15 = smov 64   ;;  %s1155_s16 = smov 4  }
  0x28   : > { %884 = dma.hbm_to_vmem [thread:$0]  (!%p1244_p10), %s1459_s2, 768, %s181_s28, [#allocation6], %s1154_s15, %s1154_s15, %s1155_s16  }
  0x29   : > { %s1022_s7 = scalar_lea.hbm %s1460_s3, 2048 }
  0x2a   : > { %p1023_p1 = scmp.ne.s32.totalorder %s1460_s3, %s1022_s7  ;;  %p1029_p6 = scmp.lt.u32.totalorder %s1022_s7, %s1460_s3 }
  0x2c   : > { %p1025_p2 = pnand %p1023_p1, %p996_p12 }
  0x2e   : > { %p1026_p4 = pneg %p1025_p2 }
  0x30   : > { %p1031_p8 = pnand %p1029_p6, %p1026_p4 }
  0x32   : > { %1034 = shalt.err (!%p1031_p8)
}
  0x33   : > { %s1035_s28 = scalar_lea.vmem %s1248_s6, 2048  ;;  %p1043_p3 = scmp.lt.s32.totalorder %s1248_s6, %s1248_s6 }
  0x34   : > { %p1036_p11 = scmp.ne.s32.totalorder %s1248_s6, %s1035_s28  ;;  %p1044_p5 = scmp.lt.s32.totalorder %s1035_s28, %s1035_s28 }
  0x36   : > { %p1038_p13 = pnand %p1036_p11, %p996_p12  ;;  %p1045_p7 = por %p1044_p5, %p1043_p3 }
  0x38   : > { %p1039_p0 = pneg %p1038_p13 }
  0x3a   : > { %p1046_p9 = pnand %p1045_p7, %p1039_p0 }
  0x3c   : > { %1049 = shalt.err (!%p1046_p9)
}
  0x3d   : > { %s1156_s12 = smov 128   ;;  %s1157_s13 = smov 8  }
  0x3e   : > { %887 = dma.hbm_to_vmem [thread:$0]  (!%p1244_p10), %s1460_s3, 2048, %s1248_s6, [#allocation6], %s1156_s12, %s1156_s12, %s1157_s13  }
  0x3f   : > { %s1301_s23 = sadd.s32 1, %s1150_s21   ;;  %s29_s30 = sadd.s32 1, %s1146_s20 }
  0x40   : > { %s26_s27 = ssub.s32 %s1150_s21, %s1301_s23  ;;  %p36_p1 = scmp.ne.s32.totalorder %s1146_s20, %s1142_s19 }
  0x41   : > { %p27_p12 = scmp.eq.s32.totalorder %s26_s27, 0  ;;  %p37_p2 = scmp.eq.s32.totalorder %s1150_s21, 0 }
  0x42   : > { %p1470_p6 = scmp.eq.s32.totalorder %s1217_s22, 3  ;;  %p898_p11 = scmp.lt.s32.totalorder %s1150_s21, 4 }
  0x43   : > { %s1310_s7 = scalar_select %p27_p12, %s1146_s20, %s29_s30  }
  0x44   : > { %p38_p4 = por %p37_p2, %p36_p1  ;;  %p1314_p8 = por %p1470_p6, %p36_p1 }
  0x45   : > { %s210_s29 = sand.u32 1, %s1146_s20   ;;  %s841_s6 = sshll.u32 %s1150_s21, 7 }
  0x46   : > { %s800_s9 = sshll.u32 %s210_s29, 3  ;;  %s1324_s28 = scalar_lea.hbm %s1457_s0, %s841_s6 }
  0x47   : > { %s214_s12 = scalar_lea.vmem [#allocation2], %s800_s9  ;;  %p1328_p10 = pnand %p898_p11, %p38_p4 }
  0x48   : > { %s221_s13 = sshll.u32 %s214_s12, 4  ;;  %s1332_s17 = scalar_lea.sflag [#allocation3], %s210_s29  ;;  %s1326_s13 = int_to_ptr.vmem [resolvable:$true] %s221_s13 }
  0x49   : > { %s1050_s27 = scalar_lea.hbm %s1324_s28, 128  ;;  %p1052_p0 = pneg %p1328_p10 }
  0x4a   : > { %p1051_p13 = scmp.ne.s32.totalorder %s1324_s28, %s1050_s27  ;;  %s1055_s6 = scalar_lea.hbm %s1457_s0, 512 }
  0x4b   : > { %p1056_p7 = scmp.lt.u32.totalorder %s1324_s28, %s1457_s0  ;;  %p1057_p9 = scmp.lt.u32.totalorder %s1055_s6, %s1050_s27 }
  0x4c   : > { %p1053_p3 = pnand %p1052_p0, %p1051_p13  ;;  %p1059_p1 = scmp.lt.u32.totalorder %s1050_s27, %s1324_s28 }
  0x4d   : > { %p1058_p12 = por %p1057_p9, %p1056_p7 }
  0x4e   : > { %p1054_p5 = pneg %p1053_p3 }
  0x4f   : > { %p1060_p2 = por %p1059_p1, %p1058_p12 }
  0x51   : > { %p1061_p4 = pnand %p1060_p2, %p1054_p5 }
  0x53   : > { %1064 = shalt.err (!%p1061_p4)
}
  0x54   : > { %s1065_s29 = scalar_lea.vmem %s1326_s13, 128  ;;  %s1158_s12 = smov [#allocation2]  }
  0x55   : > { %p1066_p6 = scmp.ne.s32.totalorder %s1326_s13, %s1065_s29  ;;  %s1070_s30 = sshll.u32 %s1158_s12, 4  ;;  %s1071_s30 = int_to_ptr.vmem [resolvable:$false] %s1070_s30 }
  0x56   : > { %s1072_s9 = scalar_lea.vmem %s1071_s30, 256  ;;  %p1073_p3 = scmp.lt.s32.totalorder %s1326_s13, %s1071_s30 }
  0x57   : > { %p1068_p11 = pnand %p1066_p6, %p1052_p0  ;;  %p1074_p7 = scmp.lt.s32.totalorder %s1072_s9, %s1065_s29 }
  0x59   : > { %p1069_p13 = pneg %p1068_p11  ;;  %p1075_p9 = por %p1074_p7, %p1073_p3 }
  0x5b   : > { %p1076_p12 = pnand %p1075_p9, %p1069_p13 }
  0x5d   : > { %1079 = shalt.err (!%p1076_p12)
}
  0x5e   : > { %891 = dma.hbm_to_vmem [thread:$0]  (!%p1328_p10), %s1324_s28, 128, %s1326_s13, %s1332_s17, %s1154_s15, %s1154_s15, %s1155_s16  }
  0x5f   : > { %p1473_p0 = scmp.ne.s32.totalorder %s1468_s26, 0 }
  0x60   : > { %s1366_s27 = sand.u32 (!%p1473_p0), 1, %s1142_s19   ;;  %p1474_p5 = scmp.ne.s32.totalorder (!%p1473_p0), %s1466_s24, 0 }
  0x61   : > { %240 = sbr.rel (%p1473_p0) target bundleno = 1224 (0x4c8), region = 40  ;;  %s804_s6 = sshll.u32 (!%p1473_p0), %s1366_s27, 3 }
  0x62   : > { %s243_s10 = scalar_lea.sflag (!%p1473_p0), [#allocation3], %s1366_s27  ;;  %s1370_s11 = scalar_lea.vmem (!%p1473_p0), [#allocation2], %s804_s6 }
  0x68   : > { %1125 = dma.done.wait (%p1474_p5), %s243_s10, 128  }
  0x69   : > { %1127 = vsyncadd (%p1474_p5), %s243_s10, 4294967168  ;;  %p1475_p10 = scmp.eq.s32.totalorder %s1217_s22, 0 }
  0x6b   : > { %1129 = dma.done.wait (%p1475_p10), [#allocation6], 2816   ;;  %p1476_p1 = pmov %p1475_p10 }
  0x6c   : > { %v1159_v0 = vmov 0.0   ;;  %vm1160_vm0 = vmmov 0   ;;  %p286_p2 = scmp.lt.s32.totalorder %s1217_s22, 3  ;;  %v1161_v1 = vmov 0   ;;  %v947_v2 = vld [vmem:[#allocation5] sm:$0xff]   ;;  %v948_v3 = vld [vmem:[#allocation5 + $0x8] sm:$0xff]   ;;  %v314_v10 = vlaneseq }
  0x6d   : > { %1131 = vsyncadd (%p1476_p1), [#allocation6], 4294964480  ;;  %853 = vmatprep.subr.bf16.mxu0 %v1159_v0  ;;  %865 = vmatprep.mubr.msk.bf16.mxu0 %vm1160_vm0, %v1159_v0  ;;  %v949_v4 = vld [vmem:[#allocation5 + $0x10] sm:$0xff]   ;;  %v950_v6 = vld [vmem:[#allocation5 + $0x18] sm:$0xff]   ;;  %vm398_vm1 = vcmask 785408   ;;  %s807_s12 = sshll.u32 %s1366_s27, 4 }
  0x6e   : > { %946 = vset.pattern.permute.xlu0 %v1161_v1  ;;  %617 = vmatprep.mubr.bf16.mxu1 %v1161_v1  ;;  %s287_s26 = scalar_select %p286_p2, %s1217_s22, 3  ;;  %v951_v7 = vld [vmem:[#allocation5 + $0x20] sm:$0xff]   ;;  %v952_v8 = vld [vmem:[#allocation5 + $0x28] sm:$0xff]   ;;  %v953_v9 = vld [vmem:[%s1370_s11] sm:$0xff]   ;;  %v1386_v11 = vshrl.u32 %v314_v10, 7 }
  0x6f   : > { %854 = vmatpush3.bf16.msra.mxu0 %v947_v2  ;;  %v1392_v13 = vld [vmem:[%s1461_s4] sm:$0xff]  ;;  %v1162_v15 = vmov 1966171168   ;;  %v957_v40 = vld [vmem:[#allocation7 + $0x14] ss:$8 sps:$4 sm:$0xff]   ;;  %s845_s30 = sshll.u32 %s1217_s22, 8 }
  0x70   : > { %s808_s24 = sshll.u32 %s287_s26, 1  ;;  %855 = vmatprep.subr.bf16.mxu0 %v1159_v0  ;;  %v316_v12 = vsub.s32 0, %v1386_v11  ;;  %v321_v14 = vsub.s32 1, %v1386_v11  ;;  %v326_v16 = vunpack.c.l.s4 %v1162_v15  ;;  %v954_v38 = vld [vmem:[#allocation7 + $0x4] ss:$8 sps:$4 sm:$0xff]   ;;  %s284_s9 = scalar_lea.vmem [#allocation8], %s807_s12 }
  0x71   : > { %s289_s28 = scalar_lea.vmem %s1458_s1, %s808_s24  ;;  %v956_v39 = vld [vmem:[#allocation7] ss:$8 sps:$4 sm:$0xff]   ;;  %585 = vmatprep.subr.bf16.mxu1 %v954_v38  ;;  %v959_v49 = vld [vmem:[#allocation7 + $0x10] ss:$8 sps:$4 sm:$0xff]   ;;  %v960_v50 = vld [vmem:[#allocation7 + $0x24] ss:$8 sps:$4 sm:$0xff]   ;;  %s1412_s26 = scalar_lea.hbm %s1462_s5, %s845_s30 }
  0x72   : > { %v308_v5 = vld [vmem:[%s289_s28] sm:$0x3]  ;;  %v317_v17 = vrot.slane %v1392_v13, %v316_v12  ;;  %v327_v19 = vunpack.c.0.s8 %v326_v16  ;;  %v322_v21 = vrot.slane %v1392_v13, %v321_v14  ;;  %586 = vmatpush1.bf16.msra.mxu1 %v956_v39  ;;  %v963_v52 = vld [vmem:[#allocation7 + $0x34] ss:$8 sps:$4 sm:$0xff]   ;;  %v965_v53 = vld [vmem:[#allocation7 + $0x30] ss:$8 sps:$4 sm:$0xff]  }
  0x73   : > { %856 = vmatpush3.bf16.msra.mxu0 %v948_v3  ;;  %311 = vperm.xlu0 %946, %v308_v5   ;;  %v962_v51 = vld [vmem:[#allocation7 + $0x20] ss:$8 sps:$4 sm:$0xff]   ;;  %v966_v54 = vld [vmem:[#allocation7 + $0x44] ss:$8 sps:$4 sm:$0xff]   ;;  %v969_v56 = vld [vmem:[#allocation7 + $0x54] ss:$8 sps:$4 sm:$0xff]  }
  0x74   : > { %857 = vmatprep.subr.bf16.mxu0 %v1159_v0  ;;  %v330_v22 = vsub.s32 %v327_v19, %v1386_v11  ;;  %587 = vmatprep.subr.bf16.mxu1 %v957_v40  ;;  %v968_v55 = vld [vmem:[#allocation7 + $0x40] ss:$8 sps:$4 sm:$0xff]   ;;  %v971_v57 = vld [vmem:[#allocation7 + $0x50] ss:$8 sps:$4 sm:$0xff]   ;;  %v972_v58 = vld [vmem:[#allocation7 + $0x64] ss:$8 sps:$4 sm:$0xff]  }
  0x75   : > { %v974_v59 = vld [vmem:[#allocation7 + $0x60] ss:$8 sps:$4 sm:$0xff]   ;;  %v975_v60 = vld [vmem:[#allocation7 + $0x74] ss:$8 sps:$4 sm:$0xff]   ;;  %v977_v61 = vld [vmem:[#allocation7 + $0x70] ss:$8 sps:$4 sm:$0xff]  }
  0x76   : > { %588 = vmatpush1.bf16.msra.mxu1 %v959_v49  ;;  %v499_v19 = vsub.s32 4, %v1386_v11  ;;  %s691_s6 = sshll.u32 %s284_s9, 4  ;;  %s677_s24 = scalar_lea.sflag [#allocation4], %s1366_s27  ;;  %s1414_s6 = int_to_ptr.vmem [resolvable:$true] %s691_s6 }
  0x77   : > { %858 = vmatpush3.bf16.msra.mxu0 %v949_v4  ;;  %589 = vmatprep.subr.bf16.mxu1 %v960_v50  ;;  %v470_v4 = vsub.s32 2, %v1386_v11  ;;  %s1080_s15 = scalar_lea.vmem %s1414_s6, 256  ;;  %s1163_s22 = smov [#allocation8]  }
  0x78   : > { %859 = vmatprep.subr.bf16.mxu0 %v1159_v0  ;;  %p1081_p4 = scmp.ne.s32.totalorder %s1414_s6, %s1080_s15  ;;  %s1084_s16 = sshll.u32 %s1163_s22, 4  ;;  %s1085_s16 = int_to_ptr.vmem [resolvable:$false] %s1084_s16 }
  0x79   : > { %s1086_s28 = scalar_lea.vmem %s1085_s16, 512  ;;  %p1087_p13 = scmp.lt.s32.totalorder %s1414_s6, %s1085_s16 }
  0x7a   : > { %590 = vmatpush1.bf16.msra.mxu1 %v962_v51  ;;  %p1082_p6 = pnand %p1081_p4, %p1314_p8  ;;  %p1088_p3 = scmp.lt.s32.totalorder %s1086_s28, %s1080_s15 }
  0x7b   : > { %860 = vmatpush3.bf16.msra.mxu0 %v950_v6  ;;  %591 = vmatprep.subr.bf16.mxu1 %v963_v52 }
  0x7c   : > { %861 = vmatprep.subr.bf16.mxu0 %v1159_v0  ;;  %p1083_p11 = pneg %p1082_p6  ;;  %p1089_p7 = por %p1088_p3, %p1087_p13 }
  0x7e   : > { %592 = vmatpush1.bf16.msra.mxu1 %v965_v53  ;;  %p1090_p9 = pnand %p1089_p7, %p1083_p11 }
  0x7f   : > { %862 = vmatpush3.bf16.msra.mxu0 %v951_v7  ;;  %593 = vmatprep.subr.bf16.mxu1 %v966_v54  ;;  %v471_v7 = vrot.slane %v1392_v13, %v470_v4 }
  0x80   : > { %863 = vmatprep.subr.bf16.mxu0 %v1159_v0 }
  0x82   : > { %594 = vmatpush1.bf16.msra.mxu1 %v968_v55 }
  0x83   : > { %864 = vmatpush3.bf16.msra.mxu0 %v952_v8  ;;  %595 = vmatprep.subr.bf16.mxu1 %v969_v56  ;;  %v476_v8 = vsub.s32 3, %v1386_v11 }
  0x85   : > { %v477_v14 = vrot.slane %v1392_v13, %v476_v8 }
  0x86   : > { %866 = vmatmul.mubr.msk.bf16.vlgmr.msra.gmra.mrb[0].mxu0 %vm398_vm1, %v953_v9  ;;  %596 = vmatpush1.bf16.msra.mxu1 %v971_v57 }
  0x87   : > { %597 = vmatprep.subr.bf16.mxu1 %v972_v58 }
  0x8a   : > { %598 = vmatpush1.bf16.msra.mxu1 %v974_v59 }
  0x8b   : > { %599 = vmatprep.subr.bf16.mxu1 %v975_v60 }
  0x8e   : > { %600 = vmatpush1.bf16.msra.mxu1 %v977_v61 }
  0xf2   : > { %v312_v18 = vpop.permute.xlu0 %311 }
  0xf3   : > { %v318_v20 = vmul.f32 %v317_v17, %v312_v18 }
  0xf5   : > { %v323_v23 = vadd.f32 %v322_v21, %v318_v20  ;;  %v295_v20 = vld [vmem:[%s1461_s4 + $0x8] sm:$0xff]  ;;  %v500_v21 = vrot.slane %v1392_v13, %v499_v19 }
  0xf7   : > { %v331_v24 = vrot.slane %v323_v23, %v330_v22 }
  0xf9   : > { %v332_v25 = vcombine.high %v331_v24, %v331_v24  ;;  %v339_v26 = vrot.slane %v331_v24, %v330_v22 }
  0xfb   : > { %v346_v27 = vrot.slane %v332_v25, %v330_v22  ;;  %v350_v28 = vrot.slane %v339_v26, %v316_v12  ;;  %v504_v22 = vrot.slane %v295_v20, %v499_v19 }
  0xfd   : > { %v354_v29 = vrot.slane %v346_v27, %v316_v12 }
 0x159   : > { %v436_v30 = vpop.f32.mrb[0].mxu0 }
 0x15a   : > { %v437_v31 = vadd.f32 %v436_v30, %v350_v28  ;;  %v867_v32 = vpop.f32.mrb[1].mxu0 }
 0x15b   : > { %v439_v33 = vpop.f32.mrb[2].mxu0 }
 0x15c   : > { %v443_v34 = vmax.f32 %v437_v31, 0.0  ;;  %v440_v35 = vadd.f32 %v439_v33, %v354_v29  ;;  %v868_v36 = vpop.f32.mrb[3].mxu0 }
 0x15e   : > { %v444_v37 = vmax.f32 %v440_v35, 0.0  ;;  %445 = vadd.xlane.f32.xlu0 %v443_v34 }
 0x160   : > { %447 = vadd.xlane.f32.xlu1 %v444_v37 }
 0x1eb   : > { %v446_v41 = vpop.xlane.xlu0 %445 }
 0x1ec   : > { %v450_v42 = vmul.f32 0.0078125, %v446_v41 }
 0x1ed   : > { %v448_v43 = vpop.xlane.xlu1 %447 }
 0x1ee   : > { %v452_v44 = vsub.f32 %v443_v34, %v450_v42  ;;  %v451_v45 = vmul.f32 0.0078125, %v448_v43 }
 0x1f0   : > { %v453_v46 = vsub.f32 %v444_v37, %v451_v45  ;;  %v454_v47 = vmul.f32 %v452_v44, %v452_v44 }
 0x1f2   : > { %456 = vadd.xlane.f32.xlu1 %v454_v47  ;;  %v455_v48 = vmul.f32 %v453_v46, %v453_v46 }
 0x1f6   : > { %458 = vadd.xlane.f32.xlu1 %v455_v48 }
 0x27f   : > { %v457_v62 = vpop.xlane.xlu1 %456 }
 0x280   : > { %v460_v63 = vmul.f32 0.0078125, %v457_v62 }
 0x282   : > { %v462_v0 = vadd.f32 1e-05, %v460_v63 }
 0x283   : > { %v459_v1 = vpop.xlane.xlu1 %458 }
 0x284   : > { %978 = vrsqrt.f32 %v462_v0  ;;  %v461_v2 = vmul.f32 0.0078125, %v459_v1 }
 0x286   : > { %v463_v3 = vadd.f32 1e-05, %v461_v2 }
 0x288   : > { %980 = vrsqrt.f32 %v463_v3 }
 0x28e   : > { %v979_v5 = vpop.eup %978 }
 0x28f   : > { %v466_v6 = vmul.f32 %v979_v5, %v452_v44 }
 0x291   : > { %v472_v12 = vmul.f32 %v471_v7, %v466_v6 }
 0x292   : > { %v981_v9 = vpop.eup %980 }
 0x293   : > { %v467_v10 = vmul.f32 %v981_v9, %v453_v46  ;;  %v478_v16 = vadd.f32 %v477_v14, %v472_v12 }
 0x295   : > { %v473_v15 = vmul.f32 %v471_v7, %v467_v10 }
 0x297   : > { %v479_v17 = vadd.f32 %v477_v14, %v473_v15 }
 0x299   : > { %v480_v18 = vpack.c.bf16 %v479_v17, %v478_v16 }
 0x29b   : > { %618 = vmatmul.mubr.bf16.vlgmr.msra.gmra.mrb[0].mxu1 %v480_v18 }
 0x36e   : > { %v619_v23 = vpop.f32.mrb[0].mxu1 }
 0x36f   : > { %v620_v24 = vadd.f32 %v619_v23, %v500_v21  ;;  %v621_v25 = vpop.f32.mrb[1].mxu1 }
 0x370   : > { %v622_v26 = vadd.f32 %v621_v25, %v504_v22  ;;  %v623_v27 = vpop.f32.mrb[2].mxu1 }
 0x371   : > { %v625_v28 = vpop.f32.mrb[3].mxu1  ;;  %v624_v29 = vadd.f32 %v623_v27, %v500_v21 }
 0x372   : > { %v626_v30 = vadd.f32 %v625_v28, %v504_v22  ;;  %v628_v31 = vmax.f32 %v620_v24, %v622_v26 }
 0x374   : > { %629 = vmax.xlane.f32.xlu1 %v628_v31  ;;  %v631_v32 = vmax.f32 %v624_v29, %v626_v30 }
 0x378   : > { %632 = vmax.xlane.f32.xlu1 %v631_v32 }
 0x401   : > { %v630_v11 = vpop.xlane.xlu1 %629 }
 0x402   : > { %v634_v33 = vsub.f32 %v620_v24, %v630_v11  ;;  %v635_v34 = vsub.f32 %v622_v26, %v630_v11 }
 0x404   : > { %v638_v35 = vmul.f32 1.442695, %v634_v33  ;;  %v640_v36 = vmul.f32 1.442695, %v635_v34 }
 0x405   : > { %v633_v37 = vpop.xlane.xlu1 %632 }
 0x406   : > { %982 = vpow2.f32 %v638_v35  ;;  %v636_v13 = vsub.f32 %v624_v29, %v633_v37  ;;  %v637_v38 = vsub.f32 %v626_v30, %v633_v37 }
 0x407   : > { %984 = vpow2.f32 %v640_v36 }
 0x408   : > { %v642_v39 = vmul.f32 1.442695, %v636_v13  ;;  %v644_v40 = vmul.f32 1.442695, %v637_v38 }
 0x40a   : > { %986 = vpow2.f32 %v642_v39 }
 0x40b   : > { %988 = vpow2.f32 %v644_v40 }
 0x410   : > { %v983_v41 = vpop.eup %982 }
 0x411   : > { %v985_v42 = vpop.eup %984 }
 0x412   : > { %v646_v43 = vadd.f32 %v985_v42, %v983_v41 }
 0x414   : > { %v987_v44 = vpop.eup %986  ;;  %647 = vadd.xlane.f32.xlu1 %v646_v43 }
 0x415   : > { %v989_v45 = vpop.eup %988 }
 0x416   : > { %v649_v46 = vadd.f32 %v989_v45, %v987_v44 }
 0x418   : > { %650 = vadd.xlane.f32.xlu1 %v649_v46 }
 0x4a1   : > { %v648_v47 = vpop.xlane.xlu1 %647 }
 0x4a2   : > { %990 = vlog2.f32 %v648_v47 }
 0x4a5   : > { %v651_v48 = vpop.xlane.xlu1 %650 }
 0x4a6   : > { %992 = vlog2.f32 %v651_v48 }
 0x4ac   : > { %v991_v49 = vpop.eup %990 }
 0x4ad   : > { %v653_v50 = vmul.f32 0.6931472, %v991_v49 }
 0x4af   : > { %v656_v51 = vadd.f32 %v653_v50, %v630_v11 }
 0x4b0   : > { %v993_v52 = vpop.eup %992 }
 0x4b1   : > { %v658_v53 = vsub.f32 %v620_v24, %v656_v51  ;;  %v659_v54 = vsub.f32 %v622_v26, %v656_v51  ;;  %v655_v55 = vmul.f32 0.6931472, %v993_v52 }
 0x4b3   : > { %v842_v56 = vpack.c.bf16 %v659_v54, %v658_v53  ;;  %v657_v57 = vadd.f32 %v655_v55, %v633_v37 }
 0x4b5   : > { %674 = vst [vmem:[%s284_s9] sm:$0xff] %v842_v56  ;;  %v660_v58 = vsub.f32 %v624_v29, %v657_v57  ;;  %v661_v59 = vsub.f32 %v626_v30, %v657_v57 }
 0x4b7   : > { %v843_v60 = vpack.c.bf16 %v661_v59, %v660_v58 }
 0x4b9   : > { %675 = vst [vmem:[%s284_s9 + $0x8] sm:$0xff] %v843_v60 }
 0x4ba   : > { %1093 = shalt.err (!%p1090_p9)
}
 0x4bb   : > { %s1094_s13 = scalar_lea.hbm %s1412_s26, 256  ;;  %s1098_s29 = scalar_lea.hbm %s1462_s5, 1024 }
 0x4bc   : > { %p1095_p12 = scmp.ne.s32.totalorder %s1412_s26, %s1094_s13  ;;  %p1099_p10 = scmp.lt.u32.totalorder %s1412_s26, %s1462_s5 }
 0x4bd   : > { %p1100_p1 = scmp.lt.u32.totalorder %s1098_s29, %s1094_s13  ;;  %p1102_p4 = scmp.lt.u32.totalorder %s1094_s13, %s1412_s26 }
 0x4be   : > { %p1096_p0 = pnand %p1095_p12, %p1314_p8 }
 0x4bf   : > { %p1101_p2 = por %p1100_p1, %p1099_p10 }
 0x4c0   : > { %p1097_p5 = pneg %p1096_p0 }
 0x4c1   : > { %p1103_p6 = por %p1102_p4, %p1101_p2 }
 0x4c3   : > { %p1104_p11 = pnand %p1103_p6, %p1097_p5 }
 0x4c5   : > { %1107 = shalt.err (!%p1104_p11)
}
 0x4c6   : > { %s1164_s9 = smov 128   ;;  %s1165_s10 = smov 8  }
 0x4c7   : > { %879 = dma.vmem_to_hbm [thread:$0]  (%p1314_p8), %s1414_s6, 256, %s1412_s26, %s677_s24, %s1164_s9, %s1164_s9, %s1165_s10  }
 0x4c8 PF: > { %p901_p13 = scmp.ge.s32.totalorder %s1150_s21, 2  ;;  %s706_s11 = sand.u32 1, %s1138_s18  }
 0x4c9   : > { %p1477_p3 = scmp.ne.s32.totalorder %s1467_s25, 0  ;;  %s707_s15 = scalar_lea.sflag [#allocation4], %s706_s11 }
 0x4cb   : > { %p893_p7 = pnand %p901_p13, %p1477_p3 }
 0x4cd   : > { %1133 = dma.done.wait (!%p893_p7), %s707_s15, 256  }
 0x4ce   : > { %1135 = vsyncadd (!%p893_p7), %s707_s15, 4294967040  ;;  %p19_p9 = scmp.ge.s32.totalorder %s1301_s23, 6   ;;  %s1478_s18 = smov %s1142_s19 }
 0x4cf   : > { %s1479_s19 = smov %s1146_s20  ;;  %s1480_s20 = smov %s1310_s7 }
 0x4d0   : > { %s1481_s21 = smov %s1301_s23  ;;  %21 = sbr.rel (!%p19_p9) target bundleno = 6 (0x6), region = 96 }
 0x4d7   :  { %712 = vsyncpa [#allocation3], 1 }
 0x4d8   :  { %714 = vsyncpa [#allocation3 + $0x1], 1 }
 0x4d9   :  { %715 = vsyncpa [#allocation6], 1 }
 0x4da   :  { %716 = vsyncpa [#allocation4], 1 }
 0x4db   :  { %718 = vsyncpa [#allocation4 + $0x1], 1 }

</bundles_post_ra>
